<compile_context>
chip_gen: v6e
topology: v6e:2x2x1
jax: 0.10.0
libtpu: 0.0.40
codegen_flags: <defaults>
</compile_context>

<pallas_src>
import functools

import jax
import jax.numpy as jnp
from jax.experimental import pallas as pl
from jax.experimental.pallas import tpu as pltpu

ALPHA = 1.0
GAMMA = 2.0  # hard-coded as an explicit square below


def _focal_loss_kernel(logits_ref, targets_ref, focal_ref):
    # logits_ref:  (TILE_N, C) in VMEM (any float dtype)
    # targets_ref: (TILE_N, 1) i32 in VMEM
    # focal_ref:   (TILE_N, 1) f32 per-sample focal loss
    x = logits_ref[...].astype(jnp.float32)                 # (TN, C)
    tn, c = x.shape

    # Numerically stable log-sum-exp over the class (lane) axis.
    m = jnp.max(x, axis=-1, keepdims=True)                  # (TN, 1)
    shifted = x - m                                         # (TN, C)
    lse = jnp.log(jnp.sum(jnp.exp(shifted), axis=-1, keepdims=True))  # (TN, 1)

    # Gather the shifted target logit directly (no full logp tensor, no f32
    # one-hot multiply).
    tgt = targets_ref[...]                                  # (TN, 1) i32
    col = jax.lax.broadcasted_iota(jnp.int32, (tn, c), 1)   # (TN, C)
    x_tgt = jnp.sum(jnp.where(col == tgt, shifted, 0.0),
                    axis=-1, keepdims=True)                 # (TN, 1)

    ce = lse - x_tgt                                        # per-sample CE
    pt = jnp.exp(-ce)
    w = 1.0 - pt
    # gamma == 2 -> w*w on the VPU instead of pow -> exp(2*log(x)) on the EUP.
    focal_ref[...] = (ALPHA * w * w * ce).astype(focal_ref.dtype)


def _choose_tile_n(n, c, itemsize, target_bytes=4 * 1024 * 1024):
    """Rows per tile: ~target_bytes per logits buffer, multiple of 8, <= pad8(N)."""
    rows = max(8, target_bytes // max(1, c * itemsize))
    rows = (rows // 8) * 8
    n_pad8 = ((n + 7) // 8) * 8
    return max(8, min(rows, n_pad8))


def focal_loss(outputs, targets, *, tile_n=None):
    """outputs: (N, C) float logits; targets: (N,) int class indices.

    Matches torch: mean(alpha * (1 - exp(-ce))**gamma * ce) with
    ce = cross_entropy(outputs, targets, reduction='none').
    """
    n, c = outputs.shape
    targets_2d = targets.astype(jnp.int32).reshape(n, 1)

    itemsize = jnp.dtype(outputs.dtype).itemsize
    if tile_n is None:
        tile_n = _choose_tile_n(n, c, itemsize)
    num_tiles = pl.cdiv(n, tile_n)

    per_sample = pl.pallas_call(
        _focal_loss_kernel,
        out_shape=jax.ShapeDtypeStruct((n, 1), jnp.float32),
        grid=(num_tiles,),
        in_specs=[
            pl.BlockSpec((tile_n, c), lambda i: (i, 0)),   # logits tile
            pl.BlockSpec((tile_n, 1), lambda i: (i, 0)),   # targets tile
        ],
        out_specs=pl.BlockSpec((tile_n, 1), lambda i: (i, 0)),
        compiler_params=pltpu.CompilerParams(
            dimension_semantics=("parallel",),             # tiles are independent
            vmem_limit_bytes=48 * 1024 * 1024,
        ),
        cost_estimate=pl.CostEstimate(
            flops=8 * n * c,
            transcendentals=n * c + 3 * n,                 # exp over (N,C) + log/exp per row
            bytes_accessed=n * c * itemsize + n * 4 + n * 4,
        ),
    )(outputs, targets_2d)

    # Tiny (N,) reduction: mean over the global batch size.
    return jnp.sum(per_sample) / jnp.float32(n)


def focal_loss_ref(outputs, targets):
    # Pure-JAX reference matching torch.nn.functional.cross_entropy semantics.
    logp = jax.nn.log_softmax(outputs.astype(jnp.float32), axis=-1)
    ce = -jnp.take_along_axis(logp, targets[:, None].astype(jnp.int32), axis=-1)[:, 0]
    pt = jnp.exp(-ce)
    return jnp.mean(ALPHA * (1.0 - pt) ** GAMMA * ce)


if __name__ == "__main__":
    key = jax.random.PRNGKey(0)

    # Case 1: small shape consistent with the module (N=8 samples, C=32 classes).
    k1, k2, k3, k4 = jax.random.split(key, 4)
    N, C = 8, 32
    outputs = jax.random.normal(k1, (N, C), dtype=jnp.float32)
    targets = jax.random.randint(k2, (N,), 0, C, dtype=jnp.int32)

    loss = focal_loss(outputs, targets)
    jax.block_until_ready(loss)
    ref = focal_loss_ref(outputs, targets)
    assert jnp.allclose(loss, ref, rtol=1e-5, atol=1e-6), (loss, ref)

    # Case 2: multi-tile path with a partial last tile (exercises tiling/padding).
    N2, C2 = 50, 32
    outputs2 = jax.random.normal(k3, (N2, C2), dtype=jnp.float32)
    targets2 = jax.random.randint(k4, (N2,), 0, C2, dtype=jnp.int32)

    loss2 = focal_loss(outputs2, targets2, tile_n=16)
    jax.block_until_ready(loss2)
    ref2 = focal_loss_ref(outputs2, targets2)
    assert jnp.allclose(loss2, ref2, rtol=1e-5, atol=1e-6), (loss2, ref2)

    print("KERNEL_OK")
</pallas_src>

<mosaic_0001>
module attributes {stable_mosaic.version = 11 : i64} {
  func.func @_focal_loss_kernel(%arg0: i32, %arg1: memref<8x32xf32, #tpu.memory_space<vmem>>, %arg2: memref<8x1xi32, #tpu.memory_space<vmem>>, %arg3: memref<8x1xf32, #tpu.memory_space<vmem>>) attributes {dimension_semantics = [#tpu.dimension_semantics<parallel>], iteration_bounds = array<i64: 1>, scalar_prefetch = 0 : i64, scratch_operands = 0 : i64, tpu.core_type = #tpu.core_type<tc>, window_params = [{transform_indices = @transform_0, window_bounds = array<i64: 8, 32>}, {transform_indices = @transform_1, window_bounds = array<i64: 8, 1>}, {transform_indices = @transform_2, window_bounds = array<i64: 8, 1>}]} {
    %c0 = arith.constant 0 : index
    %c0_0 = arith.constant 0 : index
    %0 = vector.load %arg1[%c0, %c0_0] : memref<8x32xf32, #tpu.memory_space<vmem>>, vector<8x32xf32>
    %cst = arith.constant dense<0xFF800000> : vector<8xf32>
    %1 = vector.multi_reduction <maximumf>, %0, %cst [1] : vector<8x32xf32> to vector<8xf32>
    %2 = vector.shape_cast %1 : vector<8xf32> to vector<8x1xf32>
    %3 = vector.broadcast %2 : vector<8x1xf32> to vector<8x32xf32>
    %4 = arith.subf %0, %3 : vector<8x32xf32>
    %5 = math.exp %4 : vector<8x32xf32>
    %cst_1 = arith.constant dense<0.000000e+00> : vector<8xf32>
    %6 = vector.multi_reduction <add>, %5, %cst_1 [1] : vector<8x32xf32> to vector<8xf32>
    %7 = vector.shape_cast %6 : vector<8xf32> to vector<8x1xf32>
    %8 = math.log %7 : vector<8x1xf32>
    %c0_2 = arith.constant 0 : index
    %c0_3 = arith.constant 0 : index
    %9 = vector.load %arg2[%c0_2, %c0_3] : memref<8x1xi32, #tpu.memory_space<vmem>>, vector<8x1xi32>
    %10 = tpu.iota {dimensions = array<i32: 1>} : vector<8x32xi32>
    %11 = vector.broadcast %9 : vector<8x1xi32> to vector<8x32xi32>
    %12 = arith.cmpi eq, %10, %11 : vector<8x32xi32>
    %cst_4 = arith.constant 0.000000e+00 : f32
    %13 = vector.broadcast %cst_4 : f32 to vector<8x32xf32>
    %14 = arith.select %12, %4, %13 : vector<8x32xi1>, vector<8x32xf32>
    %cst_5 = arith.constant dense<0.000000e+00> : vector<8xf32>
    %15 = vector.multi_reduction <add>, %14, %cst_5 [1] : vector<8x32xf32> to vector<8xf32>
    %16 = vector.shape_cast %15 : vector<8xf32> to vector<8x1xf32>
    %17 = arith.subf %8, %16 : vector<8x1xf32>
    %cst_6 = arith.constant 0.000000e+00 : f32
    %18 = vector.broadcast %cst_6 : f32 to vector<8x1xf32>
    %19 = arith.subf %18, %17 : vector<8x1xf32>
    %20 = math.exp %19 : vector<8x1xf32>
    %cst_7 = arith.constant 1.000000e+00 : f32
    %21 = vector.broadcast %cst_7 : f32 to vector<8x1xf32>
    %22 = arith.subf %21, %20 : vector<8x1xf32>
    %cst_8 = arith.constant 1.000000e+00 : f32
    %23 = vector.broadcast %cst_8 : f32 to vector<8x1xf32>
    %24 = arith.mulf %23, %22 : vector<8x1xf32>
    %25 = arith.mulf %24, %22 : vector<8x1xf32>
    %26 = arith.mulf %25, %17 : vector<8x1xf32>
    %c0_9 = arith.constant 0 : index
    %c0_10 = arith.constant 0 : index
    %27 = vector.load %arg3[%c0_9, %c0_10] : memref<8x1xf32, #tpu.memory_space<vmem>>, vector<8x1xf32>
    tpu.vector_store %arg3[%c0_9, %c0_10], %26 {strides = array<i32>} : memref<8x1xf32, #tpu.memory_space<vmem>>, vector<8x1xf32>,
    return
  }
  func.func @transform_0(%arg0: i32) -> (i32, i32) {
    %c0_i32 = arith.constant 0 : i32
    %c0_i32_0 = arith.constant 0 : i32
    return %arg0, %c0_i32 : i32, i32
  }
  func.func @transform_1(%arg0: i32) -> (i32, i32) {
    %c0_i32 = arith.constant 0 : i32
    %c0_i32_0 = arith.constant 0 : i32
    return %arg0, %c0_i32 : i32, i32
  }
  func.func @transform_2(%arg0: i32) -> (i32, i32) {
    %c0_i32 = arith.constant 0 : i32
    %c0_i32_0 = arith.constant 0 : i32
    return %arg0, %c0_i32 : i32, i32
  }
}

</mosaic_0001>

<bundles_post_ra>
// kernel: tpu_custom_call.1
= control target key start
LH: loop header
LB: loop body
LE: loop exit
PB: predicated region body
PF: predicated region fallthrough
CT: control target
= control target key end

     0   :  { %vm12_vm0 = vcmask 261120   ;;  %v56_v1 = vmov 0   ;;  %v25_v7 = vlaneseq  ;;  %vm42_vm2 = vcmask 7168   ;;  %s84_s0 = inlined_call_operand.vmem [shape: f32[8,32], index: 0, kind: input, shape index: {}]   ;;  %s85_s1 = inlined_call_operand.vmem [shape: s32[8,1], index: 1, kind: input, shape index: {}]   ;;  %s86_s2 = inlined_call_operand.vmem [shape: f32[8,1], index: 2, kind: output, shape index: {}]  }
   0x1   :  { %v11_v0 = vld [vmem:[%s84_s0] sm:$0xff]  ;;  %49 = vset.pattern.permute.xlu0 %v56_v1 }
   0x2   :  { %v13_v2 = vsel %vm12_vm0, %v11_v0, -inf  ;;  %v24_v3 = vld [vmem:[%s85_s1] sm:$0xff]  ;;  %v26_v8 = vand.u32 127, %v25_v7 }
   0x3   :  { %14 = vmax.xlane.f32.xlu0 %v13_v2 }
  0x19   :  { %28 = vperm.xlu0 %49, %v24_v3  }
  0x8c   :  { %v15_v4 = vpop.xlane.xlu0 %14 }
  0x8d   :  { %v16_v5 = vsub.f32 %v11_v0, %v15_v4 }
  0x8f   :  { %v17_v6 = vmul.f32 1.442695, %v16_v5 }
  0x91   :  { %50 = vpow2.f32 %v17_v6 }
  0x94   :  { %v29_v9 = vpop.permute.xlu0 %28 }
  0x95   :  { %vm30_vm1 = vcmp.eq.s32.totalorder %v26_v8, %v29_v9 }
  0x96   :  { %v31_v12 = vsel %vm30_vm1, %v16_v5, 0.0 }
  0x97   :  { %v32_v13 = vsel %vm12_vm0, %v31_v12, 0.0 }
  0x9e   :  { %v51_v10 = vpop.eup %50 }
  0x9f   :  { %v19_v11 = vsel %vm12_vm0, %v51_v10, 0.0 }
  0xa0   :  { %20 = vadd.xlane.f32.xlu1 %v19_v11 }
  0xa4   :  { %33 = vadd.xlane.f32.xlu1 %v32_v13 }
 0x129   :  { %v21_v14 = vpop.xlane.xlu1 %20 }
 0x12a   :  { %52 = vlog2.f32 %v21_v14 }
 0x12d   :  { %v34_v17 = vpop.xlane.xlu1 %33 }
 0x137   :  { %v53_v15 = vpop.eup %52 }
 0x138   :  { %v23_v16 = vmul.f32 0.6931472, %v53_v15 }
 0x13a   :  { %v35_v18 = vsub.f32 %v23_v16, %v34_v17 }
 0x13c   :  { %v36_v19 = vsub.f32 0.0, %v35_v18 }
 0x13e   :  { %v37_v20 = vmul.f32 1.442695, %v36_v19 }
 0x140   :  { %54 = vpow2.f32 %v37_v20 }
 0x14d   :  { %v55_v21 = vpop.eup %54 }
 0x14e   :  { %v39_v22 = vsub.f32 1.0, %v55_v21 }
 0x150   :  { %v40_v23 = vmul.f32 %v39_v22, %v39_v22 }
 0x152   :  { %v41_v24 = vmul.f32 %v40_v23, %v35_v18 }
 0x154   :  { %43 = vst.msk [vmem:[%s86_s2] sm:$0xff] %vm42_vm2, %v41_v24 }

</bundles_post_ra>
